<compile_context>
chip_gen: v7x
topology: tpu7x:2x2x1
jax: 0.10.0
libtpu: 0.0.40
codegen_flags: <defaults>
</compile_context>

<pallas_src>
import functools

import jax
import jax.numpy as jnp
from jax.experimental import pallas as pl
from jax.experimental.pallas import tpu as pltpu


_LANE = 128
_SUBLANE = 8


def _round_up(x, m):
    return ((x + m - 1) // m) * m


def _cdiv(a, b):
    return (a + b - 1) // b


def _apply_act(z, act):
    if act == "lipswish":
        return 0.909 * z * jax.nn.sigmoid(z)
    if act == "relu":
        return jnp.maximum(z, 0.0)
    if act == "tanh":
        return jnp.tanh(z)
    if act == "none":
        return z
    raise ValueError(f"unknown activation {act!r}")


def _mlp_fused_kernel(x_ref, w0_ref, b0_ref, wr_ref, br_ref, wl_ref, bl_ref, o_ref, *,
                      n_mid, hidden_act, final_act):
    """Fused MLP forward for one batch tile.

    x_ref : (TB, K_in)                input tile (f32, K_in = round_up(in_size, 8))
    w0_ref: (K_in, P_h)               first-layer weight  (compute dtype, zero-padded)
    b0_ref: (1, P_h)                  first-layer bias    (f32, zero-padded)
    wr_ref: (max(n_mid,1), P_h, P_h)  hidden->hidden weights, stacked
    br_ref: (max(n_mid,1), 1, P_h)    hidden->hidden biases, stacked
    wl_ref: (P_h, P_out)              last-layer weight   (compute dtype, zero-padded)
    bl_ref: (1, P_out)                last-layer bias     (f32, zero-padded)
    o_ref : (TB, P_out)               lane-dense output slab
    """
    w0 = w0_ref[...]
    x = x_ref[...].astype(w0.dtype)
    z = jnp.dot(x, w0, preferred_element_type=jnp.float32) + b0_ref[...]
    h = _apply_act(z, hidden_act)              # elementwise math stays f32 (v5e-safe)
    for l in range(n_mid):                     # static unrolled loop over hidden layers
        w = wr_ref[l]
        z = jnp.dot(h.astype(w.dtype), w, preferred_element_type=jnp.float32) + br_ref[l]
        h = _apply_act(z, hidden_act)
    wl = wl_ref[...]
    z = jnp.dot(h.astype(wl.dtype), wl, preferred_element_type=jnp.float32) + bl_ref[...]
    o_ref[...] = _apply_act(z, final_act).astype(o_ref.dtype)


def init_mlp_params(key, in_size, out_size, hidden_dim, num_layers):
    """Init matching the PyTorch module's Linear layer shapes.

    Returns a list of (W, b) with W already in (in_features, out_features) layout.
    """
    dims = [in_size] + [hidden_dim] * num_layers + [out_size]
    params = []
    for i in range(len(dims) - 1):
        key, kw, kb = jax.random.split(key, 3)
        bound = 1.0 / float(dims[i]) ** 0.5
        W = jax.random.uniform(kw, (dims[i], dims[i + 1]), jnp.float32, -bound, bound)
        b = jax.random.uniform(kb, (dims[i + 1],), jnp.float32, -bound, bound)
        params.append((W, b))
    return params


def prepare_params(params, compute_dtype=jnp.bfloat16):
    """One-time prep (outside the hot path): zero-pad feature widths to lane-dense sizes,
    stack the hidden->hidden layers, keep the (narrow) output layer separate, and cast
    matmul weights to the compute dtype.  Biases stay f32 (added after f32 accumulate)."""
    assert len(params) >= 2, "MLP always has at least two Linear layers"
    in_size = params[0][0].shape[0]
    hidden = params[0][0].shape[1]
    out_size = params[-1][0].shape[1]
    n_mid = len(params) - 2

    K_in = _round_up(in_size, _SUBLANE)     # sublane-aligned K for the first matmul
    P_h = _round_up(hidden, _LANE)          # lane-dense hidden width
    P_out = _round_up(out_size, _LANE)      # lane-dense output width (decoupled from P_h)

    W0, b0 = params[0]
    w0_p = jnp.zeros((K_in, P_h), jnp.float32).at[:in_size, :hidden].set(W0)
    b0_p = jnp.zeros((1, P_h), jnp.float32).at[0, :hidden].set(b0)

    n_stack = max(n_mid, 1)                 # keep >=1 slab so the BlockSpec is well formed
    wr_p = jnp.zeros((n_stack, P_h, P_h), jnp.float32)
    br_p = jnp.zeros((n_stack, 1, P_h), jnp.float32)
    for l, (W, b) in enumerate(params[1:-1]):
        wr_p = wr_p.at[l, : W.shape[0], : W.shape[1]].set(W)
        br_p = br_p.at[l, 0, : b.shape[0]].set(b)

    WL, bL = params[-1]
    wl_p = jnp.zeros((P_h, P_out), jnp.float32).at[: WL.shape[0], : WL.shape[1]].set(WL)
    bl_p = jnp.zeros((1, P_out), jnp.float32).at[0, : bL.shape[0]].set(bL)

    return {
        "w0": w0_p.astype(compute_dtype), "b0": b0_p,
        "wr": wr_p.astype(compute_dtype), "br": br_p,
        "wl": wl_p.astype(compute_dtype), "bl": bl_p,
        "in_size": in_size, "out_size": out_size,
        "K_in": K_in, "P_h": P_h, "P_out": P_out, "n_mid": n_mid,
    }


def _choose_batch_tiling(B, block_batch, min_tiles=2):
    """Batch tile: multiple of 8, <= ~block_batch, minimal padding waste for ragged B,
    and >= min_tiles tiles whenever the batch permits (feeds both v7x TensorCores)."""
    b8 = _round_up(max(B, 1), _SUBLANE)
    n_tiles = max(_cdiv(b8, _round_up(block_batch, _SUBLANE)), 1)
    if b8 >= 2 * _SUBLANE:
        n_tiles = max(n_tiles, min_tiles)
    tb = _round_up(_cdiv(b8, n_tiles), _SUBLANE)
    n_tiles = _cdiv(b8, tb)
    return tb, n_tiles, tb * n_tiles


def mlp_forward(x, prep, *, tanh=False, activation="lipswish", block_batch=1024,
                out_dtype=jnp.float32):
    """Forward pass equivalent to MLP.forward(x), fully fused into one Pallas kernel."""
    B, in_size = x.shape
    assert in_size == prep["in_size"]
    K_in, P_h, P_out, n_mid = prep["K_in"], prep["P_h"], prep["P_out"], prep["n_mid"]
    n_stack = prep["wr"].shape[0]

    tb, n_tiles, b_pad = _choose_batch_tiling(B, block_batch)
    pad_rows, pad_cols = b_pad - B, K_in - in_size
    if pad_rows or pad_cols:
        x = jnp.pad(x, ((0, pad_rows), (0, pad_cols)))

    final_act = "tanh" if tanh else "none"
    kernel = functools.partial(_mlp_fused_kernel, n_mid=n_mid,
                               hidden_act=activation, final_act=final_act)

    # --- VMEM budget (weights single-buffered, x/out streams double-buffered) ---
    out_itemsize = jnp.dtype(out_dtype).itemsize
    w_itemsize = jnp.dtype(prep["w0"].dtype).itemsize
    w_bytes = (prep["w0"].size + prep["wr"].size + prep["wl"].size) * w_itemsize
    bias_bytes = (prep["b0"].size + prep["br"].size + prep["bl"].size) * 4
    io_bytes = 2 * tb * (K_in * 4 + P_out * out_itemsize)
    act_bytes = 3 * tb * max(P_h, P_out) * 4
    need = w_bytes + bias_bytes + io_bytes + act_bytes
    vmem_limit = int(min(max(2 * need, 32 << 20), 64 << 20))   # stay within v7x's 64 MiB

    cost = pl.CostEstimate(
        flops=int(2 * b_pad * (K_in * P_h + n_mid * P_h * P_h + P_h * P_out)),
        transcendentals=int(b_pad * ((n_mid + 1) * P_h
                                     + (P_out if final_act == "tanh" else 0))),
        bytes_accessed=int(b_pad * (K_in * 4 + P_out * out_itemsize)
                           + w_bytes + bias_bytes),
    )

    def run(weight_mode):
        # Weight/bias blocks are grid-invariant (constant index_map -> stay VMEM-resident
        # across batch tiles); weight_mode=pl.Buffered(1) drops the useless second buffer.
        wspec = {"pipeline_mode": weight_mode} if weight_mode is not None else {}
        return pl.pallas_call(
            kernel,
            out_shape=jax.ShapeDtypeStruct((b_pad, P_out), out_dtype),
            grid=(n_tiles,),
            in_specs=[
                pl.BlockSpec((tb, K_in), lambda i: (i, 0)),                    # batch-tiled x
                pl.BlockSpec((K_in, P_h), lambda i: (0, 0), **wspec),
                pl.BlockSpec((1, P_h), lambda i: (0, 0), **wspec),
                pl.BlockSpec((n_stack, P_h, P_h), lambda i: (0, 0, 0), **wspec),
                pl.BlockSpec((n_stack, 1, P_h), lambda i: (0, 0, 0), **wspec),
                pl.BlockSpec((P_h, P_out), lambda i: (0, 0), **wspec),
                pl.BlockSpec((1, P_out), lambda i: (0, 0), **wspec),
            ],
            out_specs=pl.BlockSpec((tb, P_out), lambda i: (i, 0)),             # lane-dense slab
            compiler_params=pltpu.CompilerParams(
                dimension_semantics=("parallel",),     # batch tiles shard across v7x's 2 TCs
                vmem_limit_bytes=vmem_limit,
            ),
            cost_estimate=cost,
        )(x, prep["w0"], prep["b0"], prep["wr"], prep["br"], prep["wl"], prep["bl"])

    try:
        out_pad = run(pl.Buffered(1))
    except Exception:  # graceful fallback if this JAX build rejects single-buffered specs
        out_pad = run(None)

    return out_pad[:B, : prep["out_size"]]


def mlp_reference(x, params, *, tanh=False, activation="lipswish"):
    """Pure-JAX f32 reference matching the PyTorch module's semantics."""
    h = x
    n = len(params)
    for i, (W, b) in enumerate(params):
        h = h @ W + b
        if i < n - 1:
            if activation == "lipswish":
                h = 0.909 * h * jax.nn.sigmoid(h)
            else:
                h = jnp.maximum(h, 0.0)
        elif tanh:
            h = jnp.tanh(h)
    return h


if __name__ == "__main__":
    # Small shapes consistent with the module: pointwise MLP on (batch, in_size).
    in_size, out_size, hidden_dim, num_layers = 4, 3, 32, 3
    use_tanh = True

    key = jax.random.PRNGKey(0)
    key, kx = jax.random.split(key)
    params = init_mlp_params(key, in_size, out_size, hidden_dim, num_layers)

    # Case 1: small batch, f32 weights -> strict check against the module semantics.
    x_small = jax.random.normal(kx, (8, in_size), jnp.float32)
    prep_f32 = prepare_params(params, compute_dtype=jnp.float32)
    out_f32 = jax.block_until_ready(mlp_forward(x_small, prep_f32, tanh=use_tanh))
    ref_small = mlp_reference(x_small, params, tanh=use_tanh)
    assert out_f32.shape == (8, out_size)
    assert jnp.allclose(out_f32, ref_small, atol=1e-4, rtol=1e-4), "f32 path mismatch"

    # Case 2: ragged batch exercising the multi-tile grid (B=300 -> two 152-row tiles,
    # 304 padded rows instead of 512), bf16 matmul weights with f32 MXU accumulation.
    key, kx2 = jax.random.split(key)
    x_big = jax.random.normal(kx2, (300, in_size), jnp.float32)
    prep_bf16 = prepare_params(params, compute_dtype=jnp.bfloat16)
    out_bf16 = jax.block_until_ready(mlp_forward(x_big, prep_bf16, tanh=use_tanh))
    ref_big = mlp_reference(x_big, params, tanh=use_tanh)
    assert out_bf16.shape == (300, out_size)
    assert jnp.allclose(out_bf16, ref_big, atol=5e-2, rtol=5e-2), "bf16 path mismatch"

    # Case 3: full perf path — bf16 weights AND bf16 output store (halves HBM writeback).
    out_b16o = jax.block_until_ready(
        mlp_forward(x_big, prep_bf16, tanh=use_tanh, out_dtype=jnp.bfloat16))
    assert out_b16o.shape == (300, out_size) and out_b16o.dtype == jnp.bfloat16
    assert jnp.allclose(out_b16o.astype(jnp.float32), ref_big, atol=5e-2, rtol=5e-2), \
        "bf16-output path mismatch"

    print("KERNEL_OK")
</pallas_src>

<mosaic_0001>
module attributes {stable_mosaic.version = 11 : i64} {
  func.func @_mlp_fused_kernel(%arg0: i32, %arg1: memref<8x8xf32, #tpu.memory_space<vmem>>, %arg2: memref<8x128xf32, #tpu.memory_space<vmem>>, %arg3: memref<1x128xf32, #tpu.memory_space<vmem>>, %arg4: memref<2x128x128xf32, #tpu.memory_space<vmem>>, %arg5: memref<2x1x128xf32, #tpu.memory_space<vmem>>, %arg6: memref<128x128xf32, #tpu.memory_space<vmem>>, %arg7: memref<1x128xf32, #tpu.memory_space<vmem>>, %arg8: memref<8x128xf32, #tpu.memory_space<vmem>>) attributes {dimension_semantics = [#tpu.dimension_semantics<parallel>], iteration_bounds = array<i64: 1>, scalar_prefetch = 0 : i64, scratch_operands = 0 : i64, tpu.core_type = #tpu.core_type<tc>, window_params = [{transform_indices = @transform_0, window_bounds = array<i64: 8, 8>}, {pipeline_mode = #tpu.pipeline_mode<synchronous>, transform_indices = @transform_1, window_bounds = array<i64: 8, 128>}, {pipeline_mode = #tpu.pipeline_mode<synchronous>, transform_indices = @transform_2, window_bounds = array<i64: 1, 128>}, {pipeline_mode = #tpu.pipeline_mode<synchronous>, transform_indices = @transform_3, window_bounds = array<i64: 2, 128, 128>}, {pipeline_mode = #tpu.pipeline_mode<synchronous>, transform_indices = @transform_4, window_bounds = array<i64: 2, 1, 128>}, {pipeline_mode = #tpu.pipeline_mode<synchronous>, transform_indices = @transform_5, window_bounds = array<i64: 128, 128>}, {pipeline_mode = #tpu.pipeline_mode<synchronous>, transform_indices = @transform_6, window_bounds = array<i64: 1, 128>}, {transform_indices = @transform_7, window_bounds = array<i64: 8, 128>}]} {
    %c0 = arith.constant 0 : index
    %c0_0 = arith.constant 0 : index
    %0 = vector.load %arg2[%c0, %c0_0] : memref<8x128xf32, #tpu.memory_space<vmem>>, vector<8x128xf32>
    %c0_1 = arith.constant 0 : index
    %c0_2 = arith.constant 0 : index
    %1 = vector.load %arg1[%c0_1, %c0_2] : memref<8x8xf32, #tpu.memory_space<vmem>>, vector<8x8xf32>
    %cst = arith.constant dense<0.000000e+00> : vector<8x128xf32>
    %2 = tpu.matmul %1, %0, %cst {dimension_numbers = #tpu.dot_dimension_numbers<[1], [0], [0], [1], [0, 0, 1, 1], [], []>} : vector<8x8xf32>, vector<8x128xf32>, vector<8x128xf32> -> vector<8x128xf32>
    %c0_3 = arith.constant 0 : index
    %c0_4 = arith.constant 0 : index
    %3 = vector.load %arg3[%c0_3, %c0_4] : memref<1x128xf32, #tpu.memory_space<vmem>>, vector<1x128xf32>
    %4 = vector.broadcast %3 : vector<1x128xf32> to vector<8x128xf32>
    %5 = arith.addf %2, %4 : vector<8x128xf32>
    %cst_5 = arith.constant 0.908999979 : f32
    %6 = vector.broadcast %cst_5 : f32 to vector<8x128xf32>
    %7 = arith.mulf %6, %5 : vector<8x128xf32>
    %8 = arith.negf %5 : vector<8x128xf32>
    %9 = math.exp %8 : vector<8x128xf32>
    %cst_6 = arith.constant 1.000000e+00 : f32
    %10 = vector.broadcast %cst_6 : f32 to vector<8x128xf32>
    %11 = arith.addf %10, %9 : vector<8x128xf32>
    %12 = arith.divf %10, %11 : vector<8x128xf32>
    %13 = arith.mulf %7, %12 : vector<8x128xf32>
    %c0_7 = arith.constant 0 : index
    %c0_8 = arith.constant 0 : index
    %c0_9 = arith.constant 0 : index
    %14 = vector.load %arg4[%c0_7, %c0_8, %c0_9] : memref<2x128x128xf32, #tpu.memory_space<vmem>>, vector<1x128x128xf32>
    %15 = vector.shape_cast %14 : vector<1x128x128xf32> to vector<128x128xf32>
    %cst_10 = arith.constant dense<0.000000e+00> : vector<8x128xf32>
    %16 = tpu.matmul %13, %15, %cst_10 {dimension_numbers = #tpu.dot_dimension_numbers<[1], [0], [0], [1], [0, 0, 1, 1], [], []>} : vector<8x128xf32>, vector<128x128xf32>, vector<8x128xf32> -> vector<8x128xf32>
    %c0_11 = arith.constant 0 : index
    %c0_12 = arith.constant 0 : index
    %c0_13 = arith.constant 0 : index
    %17 = vector.load %arg5[%c0_11, %c0_12, %c0_13] : memref<2x1x128xf32, #tpu.memory_space<vmem>>, vector<1x1x128xf32>
    %18 = vector.shape_cast %17 : vector<1x1x128xf32> to vector<1x128xf32>
    %19 = vector.broadcast %18 : vector<1x128xf32> to vector<8x128xf32>
    %20 = arith.addf %16, %19 : vector<8x128xf32>
    %cst_14 = arith.constant 0.908999979 : f32
    %21 = vector.broadcast %cst_14 : f32 to vector<8x128xf32>
    %22 = arith.mulf %21, %20 : vector<8x128xf32>
    %23 = arith.negf %20 : vector<8x128xf32>
    %24 = math.exp %23 : vector<8x128xf32>
    %cst_15 = arith.constant 1.000000e+00 : f32
    %25 = vector.broadcast %cst_15 : f32 to vector<8x128xf32>
    %26 = arith.addf %25, %24 : vector<8x128xf32>
    %27 = arith.divf %25, %26 : vector<8x128xf32>
    %28 = arith.mulf %22, %27 : vector<8x128xf32>
    %c1 = arith.constant 1 : index
    %c0_16 = arith.constant 0 : index
    %c0_17 = arith.constant 0 : index
    %29 = vector.load %arg4[%c1, %c0_16, %c0_17] : memref<2x128x128xf32, #tpu.memory_space<vmem>>, vector<1x128x128xf32>
    %30 = vector.shape_cast %29 : vector<1x128x128xf32> to vector<128x128xf32>
    %cst_18 = arith.constant dense<0.000000e+00> : vector<8x128xf32>
    %31 = tpu.matmul %28, %30, %cst_18 {dimension_numbers = #tpu.dot_dimension_numbers<[1], [0], [0], [1], [0, 0, 1, 1], [], []>} : vector<8x128xf32>, vector<128x128xf32>, vector<8x128xf32> -> vector<8x128xf32>
    %c1_19 = arith.constant 1 : index
    %c0_20 = arith.constant 0 : index
    %c0_21 = arith.constant 0 : index
    %32 = vector.load %arg5[%c1_19, %c0_20, %c0_21] : memref<2x1x128xf32, #tpu.memory_space<vmem>>, vector<1x1x128xf32>
    %33 = vector.shape_cast %32 : vector<1x1x128xf32> to vector<1x128xf32>
    %34 = vector.broadcast %33 : vector<1x128xf32> to vector<8x128xf32>
    %35 = arith.addf %31, %34 : vector<8x128xf32>
    %cst_22 = arith.constant 0.908999979 : f32
    %36 = vector.broadcast %cst_22 : f32 to vector<8x128xf32>
    %37 = arith.mulf %36, %35 : vector<8x128xf32>
    %38 = arith.negf %35 : vector<8x128xf32>
    %39 = math.exp %38 : vector<8x128xf32>
    %cst_23 = arith.constant 1.000000e+00 : f32
    %40 = vector.broadcast %cst_23 : f32 to vector<8x128xf32>
    %41 = arith.addf %40, %39 : vector<8x128xf32>
    %42 = arith.divf %40, %41 : vector<8x128xf32>
    %43 = arith.mulf %37, %42 : vector<8x128xf32>
    %c0_24 = arith.constant 0 : index
    %c0_25 = arith.constant 0 : index
    %44 = vector.load %arg6[%c0_24, %c0_25] : memref<128x128xf32, #tpu.memory_space<vmem>>, vector<128x128xf32>
    %cst_26 = arith.constant dense<0.000000e+00> : vector<8x128xf32>
    %45 = tpu.matmul %43, %44, %cst_26 {dimension_numbers = #tpu.dot_dimension_numbers<[1], [0], [0], [1], [0, 0, 1, 1], [], []>} : vector<8x128xf32>, vector<128x128xf32>, vector<8x128xf32> -> vector<8x128xf32>
    %c0_27 = arith.constant 0 : index
    %c0_28 = arith.constant 0 : index
    %46 = vector.load %arg7[%c0_27, %c0_28] : memref<1x128xf32, #tpu.memory_space<vmem>>, vector<1x128xf32>
    %47 = vector.broadcast %46 : vector<1x128xf32> to vector<8x128xf32>
    %48 = arith.addf %45, %47 : vector<8x128xf32>
    %49 = math.tanh %48 : vector<8x128xf32>
    %c0_29 = arith.constant 0 : index
    %c0_30 = arith.constant 0 : index
    %50 = vector.load %arg8[%c0_29, %c0_30] : memref<8x128xf32, #tpu.memory_space<vmem>>, vector<8x128xf32>
    tpu.vector_store %arg8[%c0_29, %c0_30], %49 {strides = array<i32>} : memref<8x128xf32, #tpu.memory_space<vmem>>, vector<8x128xf32>,
    return
  }
  func.func @transform_0(%arg0: i32) -> (i32, i32) {
    %c0_i32 = arith.constant 0 : i32
    %c0_i32_0 = arith.constant 0 : i32
    return %arg0, %c0_i32 : i32, i32
  }
  func.func @transform_1(%arg0: i32) -> (i32, i32) {
    %c0_i32 = arith.constant 0 : i32
    %c0_i32_0 = arith.constant 0 : i32
    %c0_i32_1 = arith.constant 0 : i32
    return %c0_i32, %c0_i32_0 : i32, i32
  }
  func.func @transform_2(%arg0: i32) -> (i32, i32) {
    %c0_i32 = arith.constant 0 : i32
    %c0_i32_0 = arith.constant 0 : i32
    %c0_i32_1 = arith.constant 0 : i32
    return %c0_i32, %c0_i32_0 : i32, i32
  }
  func.func @transform_3(%arg0: i32) -> (i32, i32, i32) {
    %c0_i32 = arith.constant 0 : i32
    %c0_i32_0 = arith.constant 0 : i32
    %c0_i32_1 = arith.constant 0 : i32
    %c0_i32_2 = arith.constant 0 : i32
    return %c0_i32, %c0_i32_0, %c0_i32_1 : i32, i32, i32
  }
  func.func @transform_4(%arg0: i32) -> (i32, i32, i32) {
    %c0_i32 = arith.constant 0 : i32
    %c0_i32_0 = arith.constant 0 : i32
    %c0_i32_1 = arith.constant 0 : i32
    %c0_i32_2 = arith.constant 0 : i32
    return %c0_i32, %c0_i32_0, %c0_i32_1 : i32, i32, i32
  }
  func.func @transform_5(%arg0: i32) -> (i32, i32) {
    %c0_i32 = arith.constant 0 : i32
    %c0_i32_0 = arith.constant 0 : i32
    %c0_i32_1 = arith.constant 0 : i32
    return %c0_i32, %c0_i32_0 : i32, i32
  }
  func.func @transform_6(%arg0: i32) -> (i32, i32) {
    %c0_i32 = arith.constant 0 : i32
    %c0_i32_0 = arith.constant 0 : i32
    %c0_i32_1 = arith.constant 0 : i32
    return %c0_i32, %c0_i32_0 : i32, i32
  }
  func.func @transform_7(%arg0: i32) -> (i32, i32) {
    %c0_i32 = arith.constant 0 : i32
    %c0_i32_0 = arith.constant 0 : i32
    return %arg0, %c0_i32 : i32, i32
  }
}

module attributes {stable_mosaic.version = 11 : i64} {
  func.func @_mlp_fused_kernel(%arg0: i32, %arg1: memref<8x8xf32, #tpu.memory_space<vmem>>, %arg2: memref<8x128xf32, #tpu.memory_space<vmem>>, %arg3: memref<1x128xf32, #tpu.memory_space<vmem>>, %arg4: memref<2x128x128xf32, #tpu.memory_space<vmem>>, %arg5: memref<2x1x128xf32, #tpu.memory_space<vmem>>, %arg6: memref<128x128xf32, #tpu.memory_space<vmem>>, %arg7: memref<1x128xf32, #tpu.memory_space<vmem>>, %arg8: memref<8x128xf32, #tpu.memory_space<vmem>>) attributes {dimension_semantics = [#tpu.dimension_semantics<parallel>], iteration_bounds = array<i64: 1>, scalar_prefetch = 0 : i64, scratch_operands = 0 : i64, tpu.core_type = #tpu.core_type<tc>, window_params = [{transform_indices = @transform_0, window_bounds = array<i64: 8, 8>}, {pipeline_mode = #tpu.pipeline_mode<synchronous>, transform_indices = @transform_1, window_bounds = array<i64: 8, 128>}, {pipeline_mode = #tpu.pipeline_mode<synchronous>, transform_indices = @transform_2, window_bounds = array<i64: 1, 128>}, {pipeline_mode = #tpu.pipeline_mode<synchronous>, transform_indices = @transform_3, window_bounds = array<i64: 2, 128, 128>}, {pipeline_mode = #tpu.pipeline_mode<synchronous>, transform_indices = @transform_4, window_bounds = array<i64: 2, 1, 128>}, {pipeline_mode = #tpu.pipeline_mode<synchronous>, transform_indices = @transform_5, window_bounds = array<i64: 128, 128>}, {pipeline_mode = #tpu.pipeline_mode<synchronous>, transform_indices = @transform_6, window_bounds = array<i64: 1, 128>}, {transform_indices = @transform_7, window_bounds = array<i64: 8, 128>}]} {
    %c0 = arith.constant 0 : index
    %c0_0 = arith.constant 0 : index
    %0 = vector.load %arg2[%c0, %c0_0] : memref<8x128xf32, #tpu.memory_space<vmem>>, vector<8x128xf32>
    %c0_1 = arith.constant 0 : index
    %c0_2 = arith.constant 0 : index
    %1 = vector.load %arg1[%c0_1, %c0_2] : memref<8x8xf32, #tpu.memory_space<vmem>>, vector<8x8xf32>
    %cst = arith.constant dense<0.000000e+00> : vector<8x128xf32>
    %2 = tpu.matmul %1, %0, %cst {dimension_numbers = #tpu.dot_dimension_numbers<[1], [0], [0], [1], [0, 0, 1, 1], [], []>} : vector<8x8xf32>, vector<8x128xf32>, vector<8x128xf32> -> vector<8x128xf32>
    %c0_3 = arith.constant 0 : index
    %c0_4 = arith.constant 0 : index
    %3 = vector.load %arg3[%c0_3, %c0_4] : memref<1x128xf32, #tpu.memory_space<vmem>>, vector<1x128xf32>
    %4 = vector.broadcast %3 : vector<1x128xf32> to vector<8x128xf32>
    %5 = arith.addf %2, %4 : vector<8x128xf32>
    %cst_5 = arith.constant 0.908999979 : f32
    %6 = vector.broadcast %cst_5 : f32 to vector<8x128xf32>
    %7 = arith.mulf %6, %5 : vector<8x128xf32>
    %8 = arith.negf %5 : vector<8x128xf32>
    %9 = math.exp %8 : vector<8x128xf32>
    %cst_6 = arith.constant 1.000000e+00 : f32
    %10 = vector.broadcast %cst_6 : f32 to vector<8x128xf32>
    %11 = arith.addf %10, %9 : vector<8x128xf32>
    %12 = arith.divf %10, %11 : vector<8x128xf32>
    %13 = arith.mulf %7, %12 : vector<8x128xf32>
    %c0_7 = arith.constant 0 : index
    %c0_8 = arith.constant 0 : index
    %c0_9 = arith.constant 0 : index
    %14 = vector.load %arg4[%c0_7, %c0_8, %c0_9] : memref<2x128x128xf32, #tpu.memory_space<vmem>>, vector<1x128x128xf32>
    %15 = vector.shape_cast %14 : vector<1x128x128xf32> to vector<128x128xf32>
    %cst_10 = arith.constant dense<0.000000e+00> : vector<8x128xf32>
    %16 = tpu.matmul %13, %15, %cst_10 {dimension_numbers = #tpu.dot_dimension_numbers<[1], [0], [0], [1], [0, 0, 1, 1], [], []>} : vector<8x128xf32>, vector<128x128xf32>, vector<8x128xf32> -> vector<8x128xf32>
    %c0_11 = arith.constant 0 : index
    %c0_12 = arith.constant 0 : index
    %c0_13 = arith.constant 0 : index
    %17 = vector.load %arg5[%c0_11, %c0_12, %c0_13] : memref<2x1x128xf32, #tpu.memory_space<vmem>>, vector<1x1x128xf32>
    %18 = vector.shape_cast %17 : vector<1x1x128xf32> to vector<1x128xf32>
    %19 = vector.broadcast %18 : vector<1x128xf32> to vector<8x128xf32>
    %20 = arith.addf %16, %19 : vector<8x128xf32>
    %cst_14 = arith.constant 0.908999979 : f32
    %21 = vector.broadcast %cst_14 : f32 to vector<8x128xf32>
    %22 = arith.mulf %21, %20 : vector<8x128xf32>
    %23 = arith.negf %20 : vector<8x128xf32>
    %24 = math.exp %23 : vector<8x128xf32>
    %cst_15 = arith.constant 1.000000e+00 : f32
    %25 = vector.broadcast %cst_15 : f32 to vector<8x128xf32>
    %26 = arith.addf %25, %24 : vector<8x128xf32>
    %27 = arith.divf %25, %26 : vector<8x128xf32>
    %28 = arith.mulf %22, %27 : vector<8x128xf32>
    %c1 = arith.constant 1 : index
    %c0_16 = arith.constant 0 : index
    %c0_17 = arith.constant 0 : index
    %29 = vector.load %arg4[%c1, %c0_16, %c0_17] : memref<2x128x128xf32, #tpu.memory_space<vmem>>, vector<1x128x128xf32>
    %30 = vector.shape_cast %29 : vector<1x128x128xf32> to vector<128x128xf32>
    %cst_18 = arith.constant dense<0.000000e+00> : vector<8x128xf32>
    %31 = tpu.matmul %28, %30, %cst_18 {dimension_numbers = #tpu.dot_dimension_numbers<[1], [0], [0], [1], [0, 0, 1, 1], [], []>} : vector<8x128xf32>, vector<128x128xf32>, vector<8x128xf32> -> vector<8x128xf32>
    %c1_19 = arith.constant 1 : index
    %c0_20 = arith.constant 0 : index
    %c0_21 = arith.constant 0 : index
    %32 = vector.load %arg5[%c1_19, %c0_20, %c0_21] : memref<2x1x128xf32, #tpu.memory_space<vmem>>, vector<1x1x128xf32>
    %33 = vector.shape_cast %32 : vector<1x1x128xf32> to vector<1x128xf32>
    %34 = vector.broadcast %33 : vector<1x128xf32> to vector<8x128xf32>
    %35 = arith.addf %31, %34 : vector<8x128xf32>
    %cst_22 = arith.constant 0.908999979 : f32
    %36 = vector.broadcast %cst_22 : f32 to vector<8x128xf32>
    %37 = arith.mulf %36, %35 : vector<8x128xf32>
    %38 = arith.negf %35 : vector<8x128xf32>
    %39 = math.exp %38 : vector<8x128xf32>
    %cst_23 = arith.constant 1.000000e+00 : f32
    %40 = vector.broadcast %cst_23 : f32 to vector<8x128xf32>
    %41 = arith.addf %40, %39 : vector<8x128xf32>
    %42 = arith.divf %40, %41 : vector<8x128xf32>
    %43 = arith.mulf %37, %42 : vector<8x128xf32>
    %c0_24 = arith.constant 0 : index
    %c0_25 = arith.constant 0 : index
    %44 = vector.load %arg6[%c0_24, %c0_25] : memref<128x128xf32, #tpu.memory_space<vmem>>, vector<128x128xf32>
    %cst_26 = arith.constant dense<0.000000e+00> : vector<8x128xf32>
    %45 = tpu.matmul %43, %44, %cst_26 {dimension_numbers = #tpu.dot_dimension_numbers<[1], [0], [0], [1], [0, 0, 1, 1], [], []>} : vector<8x128xf32>, vector<128x128xf32>, vector<8x128xf32> -> vector<8x128xf32>
    %c0_27 = arith.constant 0 : index
    %c0_28 = arith.constant 0 : index
    %46 = vector.load %arg7[%c0_27, %c0_28] : memref<1x128xf32, #tpu.memory_space<vmem>>, vector<1x128xf32>
    %47 = vector.broadcast %46 : vector<1x128xf32> to vector<8x128xf32>
    %48 = arith.addf %45, %47 : vector<8x128xf32>
    %49 = math.tanh %48 : vector<8x128xf32>
    %c0_29 = arith.constant 0 : index
    %c0_30 = arith.constant 0 : index
    %50 = vector.load %arg8[%c0_29, %c0_30] : memref<8x128xf32, #tpu.memory_space<vmem>>, vector<8x128xf32>
    tpu.vector_store %arg8[%c0_29, %c0_30], %49 {strides = array<i32>} : memref<8x128xf32, #tpu.memory_space<vmem>>, vector<8x128xf32>,
    return
  }
  func.func @transform_0(%arg0: i32) -> (i32, i32) {
    %c0_i32 = arith.constant 0 : i32
    %c0_i32_0 = arith.constant 0 : i32
    return %arg0, %c0_i32 : i32, i32
  }
  func.func @transform_1(%arg0: i32) -> (i32, i32) {
    %c0_i32 = arith.constant 0 : i32
    %c0_i32_0 = arith.constant 0 : i32
    %c0_i32_1 = arith.constant 0 : i32
    return %c0_i32, %c0_i32_0 : i32, i32
  }
  func.func @transform_2(%arg0: i32) -> (i32, i32) {
    %c0_i32 = arith.constant 0 : i32
    %c0_i32_0 = arith.constant 0 : i32
    %c0_i32_1 = arith.constant 0 : i32
    return %c0_i32, %c0_i32_0 : i32, i32
  }
  func.func @transform_3(%arg0: i32) -> (i32, i32, i32) {
    %c0_i32 = arith.constant 0 : i32
    %c0_i32_0 = arith.constant 0 : i32
    %c0_i32_1 = arith.constant 0 : i32
    %c0_i32_2 = arith.constant 0 : i32
    return %c0_i32, %c0_i32_0, %c0_i32_1 : i32, i32, i32
  }
  func.func @transform_4(%arg0: i32) -> (i32, i32, i32) {
    %c0_i32 = arith.constant 0 : i32
    %c0_i32_0 = arith.constant 0 : i32
    %c0_i32_1 = arith.constant 0 : i32
    %c0_i32_2 = arith.constant 0 : i32
    return %c0_i32, %c0_i32_0, %c0_i32_1 : i32, i32, i32
  }
  func.func @transform_5(%arg0: i32) -> (i32, i32) {
    %c0_i32 = arith.constant 0 : i32
    %c0_i32_0 = arith.constant 0 : i32
    %c0_i32_1 = arith.constant 0 : i32
    return %c0_i32, %c0_i32_0 : i32, i32
  }
  func.func @transform_6(%arg0: i32) -> (i32, i32) {
    %c0_i32 = arith.constant 0 : i32
    %c0_i32_0 = arith.constant 0 : i32
    %c0_i32_1 = arith.constant 0 : i32
    return %c0_i32, %c0_i32_0 : i32, i32
  }
  func.func @transform_7(%arg0: i32) -> (i32, i32) {
    %c0_i32 = arith.constant 0 : i32
    %c0_i32_0 = arith.constant 0 : i32
    return %arg0, %c0_i32 : i32, i32
  }
}

</mosaic_0001>

<bundles_post_ra>
// kernel: tpu_custom_call.1
= control target key start
LH: loop header
LB: loop body
LE: loop exit
PB: predicated region body
PF: predicated region fallthrough
CT: control target
= control target key end

     0   :  { %12 = vsyncpa [#allocation3], 0  ;;  %s1026_s0 = inlined_call_operand.hbm [shape: f32[8,8], index: 0, kind: input, shape index: {}]   ;;  %s1027_s1 = inlined_call_operand.hbm [shape: f32[8,128], index: 1, kind: input, shape index: {}]   ;;  %s1028_s2 = inlined_call_operand.vmem [shape: f32[1,128], index: 2, kind: input, shape index: {}]   ;;  %s1029_s3 = inlined_call_operand.hbm [shape: f32[2,128,128], index: 3, kind: input, shape index: {}]   ;;  %s1030_s4 = inlined_call_operand.vmem [shape: f32[2,1,128], index: 4, kind: input, shape index: {}]   ;;  %s1031_s5 = inlined_call_operand.hbm [shape: f32[128,128], index: 5, kind: input, shape index: {}]   ;;  %s1032_s6 = inlined_call_operand.vmem [shape: f32[1,128], index: 6, kind: input, shape index: {}]   ;;  %s1033_s7 = inlined_call_operand.hbm [shape: f32[8,128], index: 7, kind: output, shape index: {}]  }
   0x1   :  { %13 = vsyncpa [#allocation6], 0 }
   0x2   :  { %14 = vsyncpa [#allocation9], 0 }
   0x3   :  { %15 = vsyncpa [#allocation4], 0  ;;  %s871_s24 = smov [#allocation5]   ;;  %s872_s26 = smov [#allocation2]  }
   0x4   :  { %s32_s25 = sshll.u32 %s871_s24, 4  ;;  %s22_s27 = sshll.u32 %s872_s26, 4  ;;  %s33_s25 = int_to_ptr.vmem [resolvable:$true] %s32_s25  ;;  %s23_s27 = int_to_ptr.vmem [resolvable:$true] %s22_s27 }
   0x5   :  { %s753_s30 = scalar_lea.hbm %s1027_s1, 128 }
   0x6   :  { %p754_p0 = scmp.ne.s32.totalorder %s1027_s1, %s753_s30  ;;  %p757_p1 = scmp.lt.u32.totalorder %s753_s30, %s1027_s1 }
   0x8   :  { %p759_p2 = pnand %p757_p1, %p754_p0 }
   0xa   :  { %762 = shalt.err (!%p759_p2)
}
   0xb   :  { %s763_s12 = scalar_lea.vmem %s33_s25, 128  ;;  %p768_p4 = scmp.lt.s32.totalorder %s33_s25, %s33_s25 }
   0xc   :  { %p764_p3 = scmp.ne.s32.totalorder %s33_s25, %s763_s12  ;;  %p769_p5 = scmp.lt.s32.totalorder %s763_s12, %s763_s12 }
   0xe   :  { %p770_p6 = por %p769_p5, %p768_p4 }
  0x10   :  { %p771_p7 = pnand %p770_p6, %p764_p3 }
  0x12   :  { %774 = shalt.err (!%p771_p7)
}
  0x13   :  { %35 = dma.hbm_to_vmem [thread:$0]  %s1027_s1, 128, %s33_s25, [#allocation6]  }
  0x14   :  { %s775_s17 = scalar_lea.hbm %s1026_s0, 128 }
  0x15   :  { %p776_p8 = scmp.ne.s32.totalorder %s1026_s0, %s775_s17  ;;  %p779_p9 = scmp.lt.u32.totalorder %s775_s17, %s1026_s0 }
  0x17   :  { %p781_p10 = pnand %p779_p9, %p776_p8 }
  0x19   :  { %784 = shalt.err (!%p781_p10)
}
  0x1a   :  { %s785_s22 = scalar_lea.vmem %s23_s27, 128  ;;  %p790_p12 = scmp.lt.s32.totalorder %s23_s27, %s23_s27 }
  0x1b   :  { %p786_p11 = scmp.ne.s32.totalorder %s23_s27, %s785_s22  ;;  %p791_p13 = scmp.lt.s32.totalorder %s785_s22, %s785_s22 }
  0x1d   :  { %p792_p0 = por %p791_p13, %p790_p12 }
  0x1f   :  { %p793_p1 = pnand %p792_p0, %p786_p11 }
  0x21   :  { %796 = shalt.err (!%p793_p1)
}
  0x22   :  { %25 = dma.hbm_to_vmem [thread:$0]  %s1026_s0, 128, %s23_s27, [#allocation3]  }
  0x23   :  { %s873_s24 = smov [#allocation7]   ;;  %s797_s29 = scalar_lea.hbm %s1029_s3, 4096 }
  0x24   :  { %s43_s25 = sshll.u32 %s873_s24, 4  ;;  %p798_p2 = scmp.ne.s32.totalorder %s1029_s3, %s797_s29  ;;  %s44_s25 = int_to_ptr.vmem [resolvable:$true] %s43_s25 }
  0x25   :  { %p801_p3 = scmp.lt.u32.totalorder %s797_s29, %s1029_s3 }
  0x27   :  { %p803_p4 = pnand %p801_p3, %p798_p2 }
  0x29   :  { %806 = shalt.err (!%p803_p4)
}
  0x2a   :  { %s807_s11 = scalar_lea.vmem %s44_s25, 4096  ;;  %p812_p6 = scmp.lt.s32.totalorder %s44_s25, %s44_s25 }
  0x2b   :  { %p808_p5 = scmp.ne.s32.totalorder %s44_s25, %s807_s11  ;;  %p813_p7 = scmp.lt.s32.totalorder %s807_s11, %s807_s11 }
  0x2d   :  { %p814_p8 = por %p813_p7, %p812_p6 }
  0x2f   :  { %p815_p9 = pnand %p814_p8, %p808_p5 }
  0x31   :  { %818 = shalt.err (!%p815_p9)
}
  0x32   :  { %s874_s0 = smov 128   ;;  %s875_s27 = smov 8  }
  0x33   :  { %49 = dma.hbm_to_vmem [thread:$0]  %s1029_s3, 4096, %s44_s25, [#allocation6], %s874_s0, %s874_s0, %s875_s27  }
  0x34   :  { %s876_s14 = smov [#allocation8]   ;;  %s819_s18 = scalar_lea.hbm %s1031_s5, 2048 }
  0x35   :  { %s57_s15 = sshll.u32 %s876_s14, 4  ;;  %p820_p10 = scmp.ne.s32.totalorder %s1031_s5, %s819_s18  ;;  %s58_s15 = int_to_ptr.vmem [resolvable:$true] %s57_s15 }
  0x36   :  { %p823_p11 = scmp.lt.u32.totalorder %s819_s18, %s1031_s5 }
  0x38   :  { %p825_p12 = pnand %p823_p11, %p820_p10 }
  0x3a   :  { %828 = shalt.err (!%p825_p12)
}
  0x3b   :  { %s829_s1 = scalar_lea.vmem %s58_s15, 2048  ;;  %p834_p0 = scmp.lt.s32.totalorder %s58_s15, %s58_s15 }
  0x3c   :  { %p830_p13 = scmp.ne.s32.totalorder %s58_s15, %s829_s1  ;;  %p835_p1 = scmp.lt.s32.totalorder %s829_s1, %s829_s1 }
  0x3e   :  { %p836_p2 = por %p835_p1, %p834_p0 }
  0x40   :  { %p837_p3 = pnand %p836_p2, %p830_p13 }
  0x42   :  { %840 = shalt.err (!%p837_p3)
}
  0x43   :  { %63 = dma.hbm_to_vmem [thread:$0]  %s1031_s5, 2048, %s58_s15, [#allocation9], %s874_s0, %s874_s0, %s875_s27  }
  0x44   :  { %863 = dma.done.wait [#allocation3], 128  }
  0x45   :  { %864 = vsyncadd [#allocation3], 4294967168 }
  0x46   :  { %865 = dma.done.wait [#allocation6], 4224  }
  0x47   :  { %866 = vsyncadd [#allocation6], 4294963072 }
  0x48   :  { %867 = dma.done.wait [#allocation9], 2048  }
  0x49   :  { %868 = vsyncadd [#allocation9], 4294965248  ;;  %v877_v0 = vmov 0.0   ;;  %vm878_vm0 = vmmov 0   ;;  %v879_v1 = vmov 0.0|0.0   ;;  %vm87_vm1 = vcmask 64512  }
  0x4a   :  { %547 = vmatprep.subr.mxu0 %v877_v0  ;;  %549 = vmatprep.mubr.msk.f32.mxu0 %vm878_vm0, %v877_v0  ;;  %v78_v2 = vld [vmem:[#allocation5] sm:$0xff]  ;;  %v79_v3 = vld [vmem:[#allocation2] sm:$0xff]  ;;  %v169_v4 = vld [vmem:[#allocation7] sm:$0xff] }
  0x4b   :  { %657 = vmatprep.subr.bf16.mxu1 %v879_v1  ;;  %584 = vmatprep.mubr.msk.f32.mxu1 %vm878_vm0, %v877_v0  ;;  %v170_v5 = vld [vmem:[#allocation7 + $0x8] sm:$0xff]  ;;  %v171_v7 = vld [vmem:[#allocation7 + $0x10] sm:$0xff]  ;;  %v172_v8 = vld [vmem:[#allocation7 + $0x18] sm:$0xff] }
  0x4c   :  { %548 = vmatpush3.msra.mxu0 %v78_v2  ;;  %v658_v6 = vpack.c.bf16 %v170_v5, %v169_v4  ;;  %v661_v9 = vpack.c.bf16 %v172_v8, %v171_v7  ;;  %v173_v10 = vld [vmem:[#allocation7 + $0x20] sm:$0xff]  ;;  %v174_v11 = vld [vmem:[#allocation7 + $0x28] sm:$0xff]  ;;  %v175_v13 = vld [vmem:[#allocation7 + $0x30] sm:$0xff] }
  0x4d   :  { %550 = vmatmul.mubr.msk.f32.vlgmr.msra.gmra.mrb[0].mxu0 %vm87_vm1, %v79_v3  ;;  %681 = vmatprep.subr.bf16.mxu0 %v879_v1  ;;  %v664_v12 = vpack.c.bf16 %v174_v11, %v173_v10  ;;  %v176_v14 = vld [vmem:[#allocation7 + $0x38] sm:$0xff]  ;;  %v177_v16 = vld [vmem:[#allocation7 + $0x40] sm:$0xff]  ;;  %v178_v17 = vld [vmem:[#allocation7 + $0x48] sm:$0xff] }
  0x4e   :  { %619 = vmatprep.mubr.msk.f32.mxu0 %vm878_vm0, %v877_v0  ;;  %659 = vmatpush3.bf16.msra.mxu1 %v658_v6  ;;  %v667_v15 = vpack.c.bf16 %v176_v14, %v175_v13  ;;  %v670_v18 = vpack.c.bf16 %v178_v17, %v177_v16  ;;  %v179_v19 = vld [vmem:[#allocation7 + $0x50] sm:$0xff]  ;;  %v180_v20 = vld [vmem:[#allocation7 + $0x58] sm:$0xff]  ;;  %v181_v22 = vld [vmem:[#allocation7 + $0x60] sm:$0xff] }
  0x4f   :  { %660 = vmatprep.subr.bf16.mxu1 %v879_v1  ;;  %v673_v21 = vpack.c.bf16 %v180_v20, %v179_v19  ;;  %v182_v23 = vld [vmem:[#allocation7 + $0x68] sm:$0xff]  ;;  %v183_v25 = vld [vmem:[#allocation7 + $0x70] sm:$0xff]  ;;  %v184_v26 = vld [vmem:[#allocation7 + $0x78] sm:$0xff] }
  0x50   :  { %v676_v24 = vpack.c.bf16 %v182_v23, %v181_v22  ;;  %v679_v27 = vpack.c.bf16 %v184_v26, %v183_v25  ;;  %v485_v28 = vld [vmem:[%s1028_s2] ss:$0 sm:$0xff]  ;;  %v271_v38 = vld [vmem:[#allocation7 + $0x80] sm:$0xff]  ;;  %v272_v39 = vld [vmem:[#allocation7 + $0x88] sm:$0xff] }
  0x51   :  { %v682_v40 = vpack.c.bf16 %v272_v39, %v271_v38  ;;  %v273_v41 = vld [vmem:[#allocation7 + $0x90] sm:$0xff]  ;;  %v274_v42 = vld [vmem:[#allocation7 + $0x98] sm:$0xff]  ;;  %v275_v44 = vld [vmem:[#allocation7 + $0xa0] sm:$0xff] }
  0x52   :  { %662 = vmatpush3.bf16.msra.mxu1 %v661_v9  ;;  %v685_v43 = vpack.c.bf16 %v274_v42, %v273_v41  ;;  %v276_v45 = vld [vmem:[#allocation7 + $0xa8] sm:$0xff]  ;;  %v277_v47 = vld [vmem:[#allocation7 + $0xb0] sm:$0xff]  ;;  %v278_v48 = vld [vmem:[#allocation7 + $0xb8] sm:$0xff] }
  0x53   :  { %663 = vmatprep.subr.bf16.mxu1 %v879_v1  ;;  %683 = vmatpush3.bf16.msra.mxu0 %v682_v40  ;;  %v688_v46 = vpack.c.bf16 %v276_v45, %v275_v44  ;;  %v691_v49 = vpack.c.bf16 %v278_v48, %v277_v47  ;;  %v279_v50 = vld [vmem:[#allocation7 + $0xc0] sm:$0xff]  ;;  %v280_v51 = vld [vmem:[#allocation7 + $0xc8] sm:$0xff]  ;;  %v281_v53 = vld [vmem:[#allocation7 + $0xd0] sm:$0xff] }
  0x54   :  { %684 = vmatprep.subr.bf16.mxu0 %v879_v1  ;;  %v694_v52 = vpack.c.bf16 %v280_v51, %v279_v50  ;;  %v282_v54 = vld [vmem:[#allocation7 + $0xd8] sm:$0xff]  ;;  %v283_v56 = vld [vmem:[#allocation7 + $0xe0] sm:$0xff]  ;;  %v284_v57 = vld [vmem:[#allocation7 + $0xe8] sm:$0xff] }
  0x55   :  { %v697_v55 = vpack.c.bf16 %v282_v54, %v281_v53  ;;  %v700_v58 = vpack.c.bf16 %v284_v57, %v283_v56  ;;  %v285_v59 = vld [vmem:[#allocation7 + $0xf0] sm:$0xff]  ;;  %v286_v60 = vld [vmem:[#allocation7 + $0xf8] sm:$0xff]  ;;  %v373_v9 = vld [vmem:[#allocation8] sm:$0xff] }
  0x56   :  { %665 = vmatpush3.bf16.msra.mxu1 %v664_v12  ;;  %v703_v61 = vpack.c.bf16 %v286_v60, %v285_v59  ;;  %v488_v62 = vld [vmem:[%s1030_s4] ss:$0 sm:$0xff]  ;;  %v374_v10 = vld [vmem:[#allocation8 + $0x8] sm:$0xff]  ;;  %v376_v13 = vld [vmem:[#allocation8 + $0x18] sm:$0xff] }
  0x57   :  { %666 = vmatprep.subr.bf16.mxu1 %v879_v1  ;;  %686 = vmatpush3.bf16.msra.mxu0 %v685_v43  ;;  %v706_v11 = vpack.c.bf16 %v374_v10, %v373_v9  ;;  %v375_v12 = vld [vmem:[#allocation8 + $0x10] sm:$0xff]  ;;  %v378_v16 = vld [vmem:[#allocation8 + $0x28] sm:$0xff]  ;;  %v380_v19 = vld [vmem:[#allocation8 + $0x38] sm:$0xff] }
  0x58   :  { %687 = vmatprep.subr.bf16.mxu0 %v879_v1  ;;  %v709_v14 = vpack.c.bf16 %v376_v13, %v375_v12  ;;  %v382_v22 = vld [vmem:[#allocation8 + $0x48] sm:$0xff]  ;;  %v384_v25 = vld [vmem:[#allocation8 + $0x58] sm:$0xff] }
  0x5a   :  { %668 = vmatpush3.bf16.msra.mxu1 %v667_v15  ;;  %v377_v15 = vld [vmem:[#allocation8 + $0x20] sm:$0xff] }
  0x5b   :  { %669 = vmatprep.subr.bf16.mxu1 %v879_v1  ;;  %689 = vmatpush3.bf16.msra.mxu0 %v688_v46  ;;  %v712_v17 = vpack.c.bf16 %v378_v16, %v377_v15 }
  0x5c   :  { %690 = vmatprep.subr.bf16.mxu0 %v879_v1 }
  0x5e   :  { %671 = vmatpush3.bf16.msra.mxu1 %v670_v18  ;;  %v379_v18 = vld [vmem:[#allocation8 + $0x30] sm:$0xff] }
  0x5f   :  { %672 = vmatprep.subr.bf16.mxu1 %v879_v1  ;;  %692 = vmatpush3.bf16.msra.mxu0 %v691_v49  ;;  %v715_v20 = vpack.c.bf16 %v380_v19, %v379_v18 }
  0x60   :  { %693 = vmatprep.subr.bf16.mxu0 %v879_v1 }
  0x62   :  { %674 = vmatpush3.bf16.msra.mxu1 %v673_v21  ;;  %v381_v21 = vld [vmem:[#allocation8 + $0x40] sm:$0xff] }
  0x63   :  { %675 = vmatprep.subr.bf16.mxu1 %v879_v1  ;;  %695 = vmatpush3.bf16.msra.mxu0 %v694_v52  ;;  %v718_v23 = vpack.c.bf16 %v382_v22, %v381_v21 }
  0x64   :  { %696 = vmatprep.subr.bf16.mxu0 %v879_v1 }
  0x66   :  { %677 = vmatpush3.bf16.msra.mxu1 %v676_v24  ;;  %v383_v24 = vld [vmem:[#allocation8 + $0x50] sm:$0xff] }
  0x67   :  { %678 = vmatprep.subr.bf16.mxu1 %v879_v1  ;;  %698 = vmatpush3.bf16.msra.mxu0 %v697_v55  ;;  %v721_v26 = vpack.c.bf16 %v384_v25, %v383_v24 }
  0x68   :  { %699 = vmatprep.subr.bf16.mxu0 %v879_v1 }
  0x6a   :  { %680 = vmatpush3.bf16.msra.mxu1 %v679_v27  ;;  %v385_v27 = vld [vmem:[#allocation8 + $0x60] sm:$0xff] }
  0x6b   :  { %705 = vmatprep.subr.bf16.mxu1 %v879_v1  ;;  %701 = vmatpush3.bf16.msra.mxu0 %v700_v58 }
  0x6c   :  { %702 = vmatprep.subr.bf16.mxu0 %v879_v1 }
  0x6f   :  { %704 = vmatpush3.bf16.msra.mxu0 %v703_v61 }
 0x120   :  { %v157_v29 = vpop.f32.mrb[0].mxu0 }
 0x121   :  { %v158_v30 = vadd.f32 %v485_v28, %v157_v29  ;;  %v551_v31 = vpop.f32.mrb[1].mxu0  ;;  %v386_v28 = vld [vmem:[#allocation8 + $0x68] sm:$0xff] }
 0x122   :  { %v724_v29 = vpack.c.bf16 %v386_v28, %v385_v27  ;;  %v388_v31 = vld [vmem:[#allocation8 + $0x78] sm:$0xff] }
 0x123   :  { %v487_v32 = vmul.f32 -1.442695, %v158_v30  ;;  %v161_v35 = vmul.f32 0.909, %v158_v30  ;;  %v387_v30 = vld [vmem:[#allocation8 + $0x70] sm:$0xff] }
 0x125   :  { %739 = vpow2.f32 %v487_v32  ;;  %v727_v32 = vpack.c.bf16 %v388_v31, %v387_v30 }
 0x12f   :  { %v740_v33 = vpop.eup %739 }
 0x130   :  { %v165_v34 = vadd.f32 1.0, %v740_v33  ;;  %v491_v33 = vld [vmem:[%s1030_s4 + $0x1] ss:$0 sm:$0xff]  ;;  %s880_s4 = smov [#allocation10]  }
 0x131   :  { %s474_s8 = sshll.u32 %s880_s4, 4  ;;  %s475_s8 = int_to_ptr.vmem [resolvable:$true] %s474_s8 }
 0x132   :  { %741 = vrcp.f32 %v165_v34  ;;  %s841_s9 = scalar_lea.vmem %s475_s8, 128  ;;  %p846_p5 = scmp.lt.s32.totalorder %s475_s8, %s475_s8 }
 0x133   :  { %p842_p4 = scmp.ne.s32.totalorder %s475_s8, %s841_s9  ;;  %p847_p6 = scmp.lt.s32.totalorder %s841_s9, %s841_s9 }
 0x135   :  { %p848_p7 = por %p847_p6, %p846_p5 }
 0x137   :  { %p849_p8 = pnand %p848_p7, %p842_p4 }
 0x13c   :  { %v742_v36 = vpop.eup %741 }
 0x13d   :  { %v168_v37 = vmul.f32 %v742_v36, %v161_v35 }
 0x13f   :  { %585 = vmatmul.mubr.f32.vlgmr.msra.gmra.mrb[0].mxu1 %v168_v37 }
 0x140   :  { %654 = vmatprep.mubr.msk.f32.mxu1 %vm878_vm0, %v877_v0  ;;  %707 = vmatpush3.bf16.msra.mxu1 %v706_v11 }
 0x141   :  { %708 = vmatprep.subr.bf16.mxu1 %v879_v1 }
 0x144   :  { %710 = vmatpush3.bf16.msra.mxu1 %v709_v14 }
 0x145   :  { %711 = vmatprep.subr.bf16.mxu1 %v879_v1 }
 0x148   :  { %713 = vmatpush3.bf16.msra.mxu1 %v712_v17 }
 0x149   :  { %714 = vmatprep.subr.bf16.mxu1 %v879_v1 }
 0x14c   :  { %716 = vmatpush3.bf16.msra.mxu1 %v715_v20 }
 0x14d   :  { %717 = vmatprep.subr.bf16.mxu1 %v879_v1 }
 0x150   :  { %719 = vmatpush3.bf16.msra.mxu1 %v718_v23 }
 0x151   :  { %720 = vmatprep.subr.bf16.mxu1 %v879_v1 }
 0x154   :  { %722 = vmatpush3.bf16.msra.mxu1 %v721_v26 }
 0x155   :  { %723 = vmatprep.subr.bf16.mxu1 %v879_v1 }
 0x158   :  { %725 = vmatpush3.bf16.msra.mxu1 %v724_v29 }
 0x159   :  { %726 = vmatprep.subr.bf16.mxu1 %v879_v1  ;;  %v493_v1 = vld [vmem:[%s1032_s6] ss:$0 sm:$0xff] }
 0x15c   :  { %728 = vmatpush3.bf16.msra.mxu1 %v727_v32 }
 0x212   :  { %v258_v63 = vpop.f32.mrb[0].mxu1 }
 0x213   :  { %v259_v0 = vadd.f32 %v488_v62, %v258_v63  ;;  %v586_v2 = vpop.f32.mrb[1].mxu1 }
 0x215   :  { %v489_v3 = vmul.f32 -1.442695, %v259_v0  ;;  %v262_v6 = vmul.f32 0.909, %v259_v0 }
 0x217   :  { %743 = vpow2.f32 %v489_v3 }
 0x221   :  { %v744_v4 = vpop.eup %743 }
 0x222   :  { %v266_v5 = vadd.f32 1.0, %v744_v4 }
 0x224   :  { %745 = vrcp.f32 %v266_v5 }
 0x22e   :  { %v746_v7 = vpop.eup %745 }
 0x22f   :  { %v269_v8 = vmul.f32 %v746_v7, %v262_v6 }
 0x231   :  { %620 = vmatmul.mubr.f32.vlgmr.msra.gmra.mrb[2].mxu0 %v269_v8 }
 0x304   :  { %v361_v34 = vpop.f32.mrb[2].mxu0 }
 0x305   :  { %v362_v35 = vadd.f32 %v491_v33, %v361_v34  ;;  %v621_v36 = vpop.f32.mrb[3].mxu0 }
 0x307   :  { %v492_v37 = vmul.f32 -1.442695, %v362_v35  ;;  %v365_v40 = vmul.f32 0.909, %v362_v35 }
 0x309   :  { %747 = vpow2.f32 %v492_v37 }
 0x313   :  { %v748_v38 = vpop.eup %747 }
 0x314   :  { %v369_v39 = vadd.f32 1.0, %v748_v38 }
 0x316   :  { %749 = vrcp.f32 %v369_v39 }
 0x320   :  { %v750_v41 = vpop.eup %749 }
 0x321   :  { %v372_v42 = vmul.f32 %v750_v41, %v365_v40 }
 0x323   :  { %655 = vmatmul.mubr.f32.vlgmr.msra.gmra.mrb[2].mxu1 %v372_v42 }
 0x3f6   :  { %v462_v43 = vpop.f32.mrb[2].mxu1 }
 0x3f7   :  { %v463_v44 = vadd.f32 %v493_v1, %v462_v43  ;;  %v656_v45 = vpop.f32.mrb[3].mxu1 }
 0x3f9   :  { %751 = vtanh.f32 %v463_v44 }
 0x403   :  { %v752_v46 = vpop.eup %751 }
 0x404   :  { %467 = vst [vmem:[#allocation10] sm:$0xff] %v752_v46 }
 0x405   :  { %852 = shalt.err (!%p849_p8)
}
 0x406   :  { %s853_s6 = scalar_lea.hbm %s1033_s7, 128 }
 0x407   :  { %p854_p9 = scmp.ne.s32.totalorder %s1033_s7, %s853_s6  ;;  %p857_p10 = scmp.lt.u32.totalorder %s853_s6, %s1033_s7 }
 0x409   :  { %p859_p11 = pnand %p857_p10, %p854_p9 }
 0x40b   :  { %862 = shalt.err (!%p859_p11)
}
 0x40c   :  { %477 = dma.vmem_to_hbm [thread:$0]  %s475_s8, 128, %s1033_s7, [#allocation4]  }
 0x40d   :  { %869 = dma.done.wait [#allocation4], 128  }
 0x40e   :  { %870 = vsyncadd [#allocation4], 4294967168 }
 0x40f   :  { %481 = vsyncpa [#allocation3], 1 }
 0x410   :  { %482 = vsyncpa [#allocation6], 1 }
 0x411   :  { %483 = vsyncpa [#allocation9], 1 }
 0x412   :  { %484 = vsyncpa [#allocation4], 1 }

// kernel: tpu_custom_call.1
= control target key start
LH: loop header
LB: loop body
LE: loop exit
PB: predicated region body
PF: predicated region fallthrough
CT: control target
= control target key end

     0   :  { %12 = vsyncpa [#allocation3], 0  ;;  %s1026_s0 = inlined_call_operand.hbm [shape: f32[8,8], index: 0, kind: input, shape index: {}]   ;;  %s1027_s1 = inlined_call_operand.hbm [shape: f32[8,128], index: 1, kind: input, shape index: {}]   ;;  %s1028_s2 = inlined_call_operand.vmem [shape: f32[1,128], index: 2, kind: input, shape index: {}]   ;;  %s1029_s3 = inlined_call_operand.hbm [shape: f32[2,128,128], index: 3, kind: input, shape index: {}]   ;;  %s1030_s4 = inlined_call_operand.vmem [shape: f32[2,1,128], index: 4, kind: input, shape index: {}]   ;;  %s1031_s5 = inlined_call_operand.hbm [shape: f32[128,128], index: 5, kind: input, shape index: {}]   ;;  %s1032_s6 = inlined_call_operand.vmem [shape: f32[1,128], index: 6, kind: input, shape index: {}]   ;;  %s1033_s7 = inlined_call_operand.hbm [shape: f32[8,128], index: 7, kind: output, shape index: {}]  }
   0x1   :  { %13 = vsyncpa [#allocation6], 0 }
   0x2   :  { %14 = vsyncpa [#allocation9], 0 }
   0x3   :  { %15 = vsyncpa [#allocation4], 0  ;;  %s871_s24 = smov [#allocation5]   ;;  %s872_s26 = smov [#allocation2]  }
   0x4   :  { %s32_s25 = sshll.u32 %s871_s24, 4  ;;  %s22_s27 = sshll.u32 %s872_s26, 4  ;;  %s33_s25 = int_to_ptr.vmem [resolvable:$true] %s32_s25  ;;  %s23_s27 = int_to_ptr.vmem [resolvable:$true] %s22_s27 }
   0x5   :  { %s753_s30 = scalar_lea.hbm %s1027_s1, 128 }
   0x6   :  { %p754_p0 = scmp.ne.s32.totalorder %s1027_s1, %s753_s30  ;;  %p757_p1 = scmp.lt.u32.totalorder %s753_s30, %s1027_s1 }
   0x8   :  { %p759_p2 = pnand %p757_p1, %p754_p0 }
   0xa   :  { %762 = shalt.err (!%p759_p2)
}
   0xb   :  { %s763_s12 = scalar_lea.vmem %s33_s25, 128  ;;  %p768_p4 = scmp.lt.s32.totalorder %s33_s25, %s33_s25 }
   0xc   :  { %p764_p3 = scmp.ne.s32.totalorder %s33_s25, %s763_s12  ;;  %p769_p5 = scmp.lt.s32.totalorder %s763_s12, %s763_s12 }
   0xe   :  { %p770_p6 = por %p769_p5, %p768_p4 }
  0x10   :  { %p771_p7 = pnand %p770_p6, %p764_p3 }
  0x12   :  { %774 = shalt.err (!%p771_p7)
}
  0x13   :  { %35 = dma.hbm_to_vmem [thread:$0]  %s1027_s1, 128, %s33_s25, [#allocation6]  }
  0x14   :  { %s775_s17 = scalar_lea.hbm %s1026_s0, 128 }
  0x15   :  { %p776_p8 = scmp.ne.s32.totalorder %s1026_s0, %s775_s17  ;;  %p779_p9 = scmp.lt.u32.totalorder %s775_s17, %s1026_s0 }
  0x17   :  { %p781_p10 = pnand %p779_p9, %p776_p8 }
  0x19   :  { %784 = shalt.err (!%p781_p10)
}
  0x1a   :  { %s785_s22 = scalar_lea.vmem %s23_s27, 128  ;;  %p790_p12 = scmp.lt.s32.totalorder %s23_s27, %s23_s27 }
  0x1b   :  { %p786_p11 = scmp.ne.s32.totalorder %s23_s27, %s785_s22  ;;  %p791_p13 = scmp.lt.s32.totalorder %s785_s22, %s785_s22 }
  0x1d   :  { %p792_p0 = por %p791_p13, %p790_p12 }
  0x1f   :  { %p793_p1 = pnand %p792_p0, %p786_p11 }
  0x21   :  { %796 = shalt.err (!%p793_p1)
}
  0x22   :  { %25 = dma.hbm_to_vmem [thread:$0]  %s1026_s0, 128, %s23_s27, [#allocation3]  }
  0x23   :  { %s873_s24 = smov [#allocation7]   ;;  %s797_s29 = scalar_lea.hbm %s1029_s3, 4096 }
  0x24   :  { %s43_s25 = sshll.u32 %s873_s24, 4  ;;  %p798_p2 = scmp.ne.s32.totalorder %s1029_s3, %s797_s29  ;;  %s44_s25 = int_to_ptr.vmem [resolvable:$true] %s43_s25 }
  0x25   :  { %p801_p3 = scmp.lt.u32.totalorder %s797_s29, %s1029_s3 }
  0x27   :  { %p803_p4 = pnand %p801_p3, %p798_p2 }
  0x29   :  { %806 = shalt.err (!%p803_p4)
}
  0x2a   :  { %s807_s11 = scalar_lea.vmem %s44_s25, 4096  ;;  %p812_p6 = scmp.lt.s32.totalorder %s44_s25, %s44_s25 }
  0x2b   :  { %p808_p5 = scmp.ne.s32.totalorder %s44_s25, %s807_s11  ;;  %p813_p7 = scmp.lt.s32.totalorder %s807_s11, %s807_s11 }
  0x2d   :  { %p814_p8 = por %p813_p7, %p812_p6 }
  0x2f   :  { %p815_p9 = pnand %p814_p8, %p808_p5 }
  0x31   :  { %818 = shalt.err (!%p815_p9)
}
  0x32   :  { %s874_s0 = smov 128   ;;  %s875_s27 = smov 8  }
  0x33   :  { %49 = dma.hbm_to_vmem [thread:$0]  %s1029_s3, 4096, %s44_s25, [#allocation6], %s874_s0, %s874_s0, %s875_s27  }
  0x34   :  { %s876_s14 = smov [#allocation8]   ;;  %s819_s18 = scalar_lea.hbm %s1031_s5, 2048 }
  0x35   :  { %s57_s15 = sshll.u32 %s876_s14, 4  ;;  %p820_p10 = scmp.ne.s32.totalorder %s1031_s5, %s819_s18  ;;  %s58_s15 = int_to_ptr.vmem [resolvable:$true] %s57_s15 }
  0x36   :  { %p823_p11 = scmp.lt.u32.totalorder %s819_s18, %s1031_s5 }
  0x38   :  { %p825_p12 = pnand %p823_p11, %p820_p10 }
  0x3a   :  { %828 = shalt.err (!%p825_p12)
}
  0x3b   :  { %s829_s1 = scalar_lea.vmem %s58_s15, 2048  ;;  %p834_p0 = scmp.lt.s32.totalorder %s58_s15, %s58_s15 }
  0x3c   :  { %p830_p13 = scmp.ne.s32.totalorder %s58_s15, %s829_s1  ;;  %p835_p1 = scmp.lt.s32.totalorder %s829_s1, %s829_s1 }
  0x3e   :  { %p836_p2 = por %p835_p1, %p834_p0 }
  0x40   :  { %p837_p3 = pnand %p836_p2, %p830_p13 }
  0x42   :  { %840 = shalt.err (!%p837_p3)
}
  0x43   :  { %63 = dma.hbm_to_vmem [thread:$0]  %s1031_s5, 2048, %s58_s15, [#allocation9], %s874_s0, %s874_s0, %s875_s27  }
  0x44   :  { %863 = dma.done.wait [#allocation3], 128  }
  0x45   :  { %864 = vsyncadd [#allocation3], 4294967168 }
  0x46   :  { %865 = dma.done.wait [#allocation6], 4224  }
  0x47   :  { %866 = vsyncadd [#allocation6], 4294963072 }
  0x48   :  { %867 = dma.done.wait [#allocation9], 2048  }
  0x49   :  { %868 = vsyncadd [#allocation9], 4294965248  ;;  %v877_v0 = vmov 0.0   ;;  %vm878_vm0 = vmmov 0   ;;  %v879_v1 = vmov 0.0|0.0   ;;  %vm87_vm1 = vcmask 64512  }
  0x4a   :  { %547 = vmatprep.subr.mxu0 %v877_v0  ;;  %549 = vmatprep.mubr.msk.f32.mxu0 %vm878_vm0, %v877_v0  ;;  %v78_v2 = vld [vmem:[#allocation5] sm:$0xff]  ;;  %v79_v3 = vld [vmem:[#allocation2] sm:$0xff]  ;;  %v169_v4 = vld [vmem:[#allocation7] sm:$0xff] }
  0x4b   :  { %657 = vmatprep.subr.bf16.mxu1 %v879_v1  ;;  %584 = vmatprep.mubr.msk.f32.mxu1 %vm878_vm0, %v877_v0  ;;  %v170_v5 = vld [vmem:[#allocation7 + $0x8] sm:$0xff]  ;;  %v171_v7 = vld [vmem:[#allocation7 + $0x10] sm:$0xff]  ;;  %v172_v8 = vld [vmem:[#allocation7 + $0x18] sm:$0xff] }
  0x4c   :  { %548 = vmatpush3.msra.mxu0 %v78_v2  ;;  %v658_v6 = vpack.c.bf16 %v170_v5, %v169_v4  ;;  %v661_v9 = vpack.c.bf16 %v172_v8, %v171_v7  ;;  %v173_v10 = vld [vmem:[#allocation7 + $0x20] sm:$0xff]  ;;  %v174_v11 = vld [vmem:[#allocation7 + $0x28] sm:$0xff]  ;;  %v175_v13 = vld [vmem:[#allocation7 + $0x30] sm:$0xff] }
  0x4d   :  { %550 = vmatmul.mubr.msk.f32.vlgmr.msra.gmra.mrb[0].mxu0 %vm87_vm1, %v79_v3  ;;  %681 = vmatprep.subr.bf16.mxu0 %v879_v1  ;;  %v664_v12 = vpack.c.bf16 %v174_v11, %v173_v10  ;;  %v176_v14 = vld [vmem:[#allocation7 + $0x38] sm:$0xff]  ;;  %v177_v16 = vld [vmem:[#allocation7 + $0x40] sm:$0xff]  ;;  %v178_v17 = vld [vmem:[#allocation7 + $0x48] sm:$0xff] }
  0x4e   :  { %619 = vmatprep.mubr.msk.f32.mxu0 %vm878_vm0, %v877_v0  ;;  %659 = vmatpush3.bf16.msra.mxu1 %v658_v6  ;;  %v667_v15 = vpack.c.bf16 %v176_v14, %v175_v13  ;;  %v670_v18 = vpack.c.bf16 %v178_v17, %v177_v16  ;;  %v179_v19 = vld [vmem:[#allocation7 + $0x50] sm:$0xff]  ;;  %v180_v20 = vld [vmem:[#allocation7 + $0x58] sm:$0xff]  ;;  %v181_v22 = vld [vmem:[#allocation7 + $0x60] sm:$0xff] }
  0x4f   :  { %660 = vmatprep.subr.bf16.mxu1 %v879_v1  ;;  %v673_v21 = vpack.c.bf16 %v180_v20, %v179_v19  ;;  %v182_v23 = vld [vmem:[#allocation7 + $0x68] sm:$0xff]  ;;  %v183_v25 = vld [vmem:[#allocation7 + $0x70] sm:$0xff]  ;;  %v184_v26 = vld [vmem:[#allocation7 + $0x78] sm:$0xff] }
  0x50   :  { %v676_v24 = vpack.c.bf16 %v182_v23, %v181_v22  ;;  %v679_v27 = vpack.c.bf16 %v184_v26, %v183_v25  ;;  %v485_v28 = vld [vmem:[%s1028_s2] ss:$0 sm:$0xff]  ;;  %v271_v38 = vld [vmem:[#allocation7 + $0x80] sm:$0xff]  ;;  %v272_v39 = vld [vmem:[#allocation7 + $0x88] sm:$0xff] }
  0x51   :  { %v682_v40 = vpack.c.bf16 %v272_v39, %v271_v38  ;;  %v273_v41 = vld [vmem:[#allocation7 + $0x90] sm:$0xff]  ;;  %v274_v42 = vld [vmem:[#allocation7 + $0x98] sm:$0xff]  ;;  %v275_v44 = vld [vmem:[#allocation7 + $0xa0] sm:$0xff] }
  0x52   :  { %662 = vmatpush3.bf16.msra.mxu1 %v661_v9  ;;  %v685_v43 = vpack.c.bf16 %v274_v42, %v273_v41  ;;  %v276_v45 = vld [vmem:[#allocation7 + $0xa8] sm:$0xff]  ;;  %v277_v47 = vld [vmem:[#allocation7 + $0xb0] sm:$0xff]  ;;  %v278_v48 = vld [vmem:[#allocation7 + $0xb8] sm:$0xff] }
  0x53   :  { %663 = vmatprep.subr.bf16.mxu1 %v879_v1  ;;  %683 = vmatpush3.bf16.msra.mxu0 %v682_v40  ;;  %v688_v46 = vpack.c.bf16 %v276_v45, %v275_v44  ;;  %v691_v49 = vpack.c.bf16 %v278_v48, %v277_v47  ;;  %v279_v50 = vld [vmem:[#allocation7 + $0xc0] sm:$0xff]  ;;  %v280_v51 = vld [vmem:[#allocation7 + $0xc8] sm:$0xff]  ;;  %v281_v53 = vld [vmem:[#allocation7 + $0xd0] sm:$0xff] }
  0x54   :  { %684 = vmatprep.subr.bf16.mxu0 %v879_v1  ;;  %v694_v52 = vpack.c.bf16 %v280_v51, %v279_v50  ;;  %v282_v54 = vld [vmem:[#allocation7 + $0xd8] sm:$0xff]  ;;  %v283_v56 = vld [vmem:[#allocation7 + $0xe0] sm:$0xff]  ;;  %v284_v57 = vld [vmem:[#allocation7 + $0xe8] sm:$0xff] }
  0x55   :  { %v697_v55 = vpack.c.bf16 %v282_v54, %v281_v53  ;;  %v700_v58 = vpack.c.bf16 %v284_v57, %v283_v56  ;;  %v285_v59 = vld [vmem:[#allocation7 + $0xf0] sm:$0xff]  ;;  %v286_v60 = vld [vmem:[#allocation7 + $0xf8] sm:$0xff]  ;;  %v373_v9 = vld [vmem:[#allocation8] sm:$0xff] }
  0x56   :  { %665 = vmatpush3.bf16.msra.mxu1 %v664_v12  ;;  %v703_v61 = vpack.c.bf16 %v286_v60, %v285_v59  ;;  %v488_v62 = vld [vmem:[%s1030_s4] ss:$0 sm:$0xff]  ;;  %v374_v10 = vld [vmem:[#allocation8 + $0x8] sm:$0xff]  ;;  %v376_v13 = vld [vmem:[#allocation8 + $0x18] sm:$0xff] }
  0x57   :  { %666 = vmatprep.subr.bf16.mxu1 %v879_v1  ;;  %686 = vmatpush3.bf16.msra.mxu0 %v685_v43  ;;  %v706_v11 = vpack.c.bf16 %v374_v10, %v373_v9  ;;  %v375_v12 = vld [vmem:[#allocation8 + $0x10] sm:$0xff]  ;;  %v378_v16 = vld [vmem:[#allocation8 + $0x28] sm:$0xff]  ;;  %v380_v19 = vld [vmem:[#allocation8 + $0x38] sm:$0xff] }
  0x58   :  { %687 = vmatprep.subr.bf16.mxu0 %v879_v1  ;;  %v709_v14 = vpack.c.bf16 %v376_v13, %v375_v12  ;;  %v382_v22 = vld [vmem:[#allocation8 + $0x48] sm:$0xff]  ;;  %v384_v25 = vld [vmem:[#allocation8 + $0x58] sm:$0xff] }
  0x5a   :  { %668 = vmatpush3.bf16.msra.mxu1 %v667_v15  ;;  %v377_v15 = vld [vmem:[#allocation8 + $0x20] sm:$0xff] }
  0x5b   :  { %669 = vmatprep.subr.bf16.mxu1 %v879_v1  ;;  %689 = vmatpush3.bf16.msra.mxu0 %v688_v46  ;;  %v712_v17 = vpack.c.bf16 %v378_v16, %v377_v15 }
  0x5c   :  { %690 = vmatprep.subr.bf16.mxu0 %v879_v1 }
  0x5e   :  { %671 = vmatpush3.bf16.msra.mxu1 %v670_v18  ;;  %v379_v18 = vld [vmem:[#allocation8 + $0x30] sm:$0xff] }
  0x5f   :  { %672 = vmatprep.subr.bf16.mxu1 %v879_v1  ;;  %692 = vmatpush3.bf16.msra.mxu0 %v691_v49  ;;  %v715_v20 = vpack.c.bf16 %v380_v19, %v379_v18 }
  0x60   :  { %693 = vmatprep.subr.bf16.mxu0 %v879_v1 }
  0x62   :  { %674 = vmatpush3.bf16.msra.mxu1 %v673_v21  ;;  %v381_v21 = vld [vmem:[#allocation8 + $0x40] sm:$0xff] }
  0x63   :  { %675 = vmatprep.subr.bf16.mxu1 %v879_v1  ;;  %695 = vmatpush3.bf16.msra.mxu0 %v694_v52  ;;  %v718_v23 = vpack.c.bf16 %v382_v22, %v381_v21 }
  0x64   :  { %696 = vmatprep.subr.bf16.mxu0 %v879_v1 }
  0x66   :  { %677 = vmatpush3.bf16.msra.mxu1 %v676_v24  ;;  %v383_v24 = vld [vmem:[#allocation8 + $0x50] sm:$0xff] }
  0x67   :  { %678 = vmatprep.subr.bf16.mxu1 %v879_v1  ;;  %698 = vmatpush3.bf16.msra.mxu0 %v697_v55  ;;  %v721_v26 = vpack.c.bf16 %v384_v25, %v383_v24 }
  0x68   :  { %699 = vmatprep.subr.bf16.mxu0 %v879_v1 }
  0x6a   :  { %680 = vmatpush3.bf16.msra.mxu1 %v679_v27  ;;  %v385_v27 = vld [vmem:[#allocation8 + $0x60] sm:$0xff] }
  0x6b   :  { %705 = vmatprep.subr.bf16.mxu1 %v879_v1  ;;  %701 = vmatpush3.bf16.msra.mxu0 %v700_v58 }
  0x6c   :  { %702 = vmatprep.subr.bf16.mxu0 %v879_v1 }
  0x6f   :  { %704 = vmatpush3.bf16.msra.mxu0 %v703_v61 }
 0x120   :  { %v157_v29 = vpop.f32.mrb[0].mxu0 }
 0x121   :  { %v158_v30 = vadd.f32 %v485_v28, %v157_v29  ;;  %v551_v31 = vpop.f32.mrb[1].mxu0  ;;  %v386_v28 = vld [vmem:[#allocation8 + $0x68] sm:$0xff] }
 0x122   :  { %v724_v29 = vpack.c.bf16 %v386_v28, %v385_v27  ;;  %v388_v31 = vld [vmem:[#allocation8 + $0x78] sm:$0xff] }
 0x123   :  { %v487_v32 = vmul.f32 -1.442695, %v158_v30  ;;  %v161_v35 = vmul.f32 0.909, %v158_v30  ;;  %v387_v30 = vld [vmem:[#allocation8 + $0x70] sm:$0xff] }
 0x125   :  { %739 = vpow2.f32 %v487_v32  ;;  %v727_v32 = vpack.c.bf16 %v388_v31, %v387_v30 }
 0x12f   :  { %v740_v33 = vpop.eup %739 }
 0x130   :  { %v165_v34 = vadd.f32 1.0, %v740_v33  ;;  %v491_v33 = vld [vmem:[%s1030_s4 + $0x1] ss:$0 sm:$0xff]  ;;  %s880_s4 = smov [#allocation10]  }
 0x131   :  { %s474_s8 = sshll.u32 %s880_s4, 4  ;;  %s475_s8 = int_to_ptr.vmem [resolvable:$true] %s474_s8 }
 0x132   :  { %741 = vrcp.f32 %v165_v34  ;;  %s841_s9 = scalar_lea.vmem %s475_s8, 128  ;;  %p846_p5 = scmp.lt.s32.totalorder %s475_s8, %s475_s8 }
 0x133   :  { %p842_p4 = scmp.ne.s32.totalorder %s475_s8, %s841_s9  ;;  %p847_p6 = scmp.lt.s32.totalorder %s841_s9, %s841_s9 }
 0x135   :  { %p848_p7 = por %p847_p6, %p846_p5 }
 0x137   :  { %p849_p8 = pnand %p848_p7, %p842_p4 }
 0x13c   :  { %v742_v36 = vpop.eup %741 }
 0x13d   :  { %v168_v37 = vmul.f32 %v742_v36, %v161_v35 }
 0x13f   :  { %585 = vmatmul.mubr.f32.vlgmr.msra.gmra.mrb[0].mxu1 %v168_v37 }
 0x140   :  { %654 = vmatprep.mubr.msk.f32.mxu1 %vm878_vm0, %v877_v0  ;;  %707 = vmatpush3.bf16.msra.mxu1 %v706_v11 }
 0x141   :  { %708 = vmatprep.subr.bf16.mxu1 %v879_v1 }
 0x144   :  { %710 = vmatpush3.bf16.msra.mxu1 %v709_v14 }
 0x145   :  { %711 = vmatprep.subr.bf16.mxu1 %v879_v1 }
 0x148   :  { %713 = vmatpush3.bf16.msra.mxu1 %v712_v17 }
 0x149   :  { %714 = vmatprep.subr.bf16.mxu1 %v879_v1 }
 0x14c   :  { %716 = vmatpush3.bf16.msra.mxu1 %v715_v20 }
 0x14d   :  { %717 = vmatprep.subr.bf16.mxu1 %v879_v1 }
 0x150   :  { %719 = vmatpush3.bf16.msra.mxu1 %v718_v23 }
 0x151   :  { %720 = vmatprep.subr.bf16.mxu1 %v879_v1 }
 0x154   :  { %722 = vmatpush3.bf16.msra.mxu1 %v721_v26 }
 0x155   :  { %723 = vmatprep.subr.bf16.mxu1 %v879_v1 }
 0x158   :  { %725 = vmatpush3.bf16.msra.mxu1 %v724_v29 }
 0x159   :  { %726 = vmatprep.subr.bf16.mxu1 %v879_v1  ;;  %v493_v1 = vld [vmem:[%s1032_s6] ss:$0 sm:$0xff] }
 0x15c   :  { %728 = vmatpush3.bf16.msra.mxu1 %v727_v32 }
 0x212   :  { %v258_v63 = vpop.f32.mrb[0].mxu1 }
 0x213   :  { %v259_v0 = vadd.f32 %v488_v62, %v258_v63  ;;  %v586_v2 = vpop.f32.mrb[1].mxu1 }
 0x215   :  { %v489_v3 = vmul.f32 -1.442695, %v259_v0  ;;  %v262_v6 = vmul.f32 0.909, %v259_v0 }
 0x217   :  { %743 = vpow2.f32 %v489_v3 }
 0x221   :  { %v744_v4 = vpop.eup %743 }
 0x222   :  { %v266_v5 = vadd.f32 1.0, %v744_v4 }
 0x224   :  { %745 = vrcp.f32 %v266_v5 }
 0x22e   :  { %v746_v7 = vpop.eup %745 }
 0x22f   :  { %v269_v8 = vmul.f32 %v746_v7, %v262_v6 }
 0x231   :  { %620 = vmatmul.mubr.f32.vlgmr.msra.gmra.mrb[2].mxu0 %v269_v8 }
 0x304   :  { %v361_v34 = vpop.f32.mrb[2].mxu0 }
 0x305   :  { %v362_v35 = vadd.f32 %v491_v33, %v361_v34  ;;  %v621_v36 = vpop.f32.mrb[3].mxu0 }
 0x307   :  { %v492_v37 = vmul.f32 -1.442695, %v362_v35  ;;  %v365_v40 = vmul.f32 0.909, %v362_v35 }
 0x309   :  { %747 = vpow2.f32 %v492_v37 }
 0x313   :  { %v748_v38 = vpop.eup %747 }
 0x314   :  { %v369_v39 = vadd.f32 1.0, %v748_v38 }
 0x316   :  { %749 = vrcp.f32 %v369_v39 }
 0x320   :  { %v750_v41 = vpop.eup %749 }
 0x321   :  { %v372_v42 = vmul.f32 %v750_v41, %v365_v40 }
 0x323   :  { %655 = vmatmul.mubr.f32.vlgmr.msra.gmra.mrb[2].mxu1 %v372_v42 }
 0x3f6   :  { %v462_v43 = vpop.f32.mrb[2].mxu1 }
 0x3f7   :  { %v463_v44 = vadd.f32 %v493_v1, %v462_v43  ;;  %v656_v45 = vpop.f32.mrb[3].mxu1 }
 0x3f9   :  { %751 = vtanh.f32 %v463_v44 }
 0x403   :  { %v752_v46 = vpop.eup %751 }
 0x404   :  { %467 = vst [vmem:[#allocation10] sm:$0xff] %v752_v46 }
 0x405   :  { %852 = shalt.err (!%p849_p8)
}
 0x406   :  { %s853_s6 = scalar_lea.hbm %s1033_s7, 128 }
 0x407   :  { %p854_p9 = scmp.ne.s32.totalorder %s1033_s7, %s853_s6  ;;  %p857_p10 = scmp.lt.u32.totalorder %s853_s6, %s1033_s7 }
 0x409   :  { %p859_p11 = pnand %p857_p10, %p854_p9 }
 0x40b   :  { %862 = shalt.err (!%p859_p11)
}
 0x40c   :  { %477 = dma.vmem_to_hbm [thread:$0]  %s475_s8, 128, %s1033_s7, [#allocation4]  }
 0x40d   :  { %869 = dma.done.wait [#allocation4], 128  }
 0x40e   :  { %870 = vsyncadd [#allocation4], 4294967168 }
 0x40f   :  { %481 = vsyncpa [#allocation3], 1 }
 0x410   :  { %482 = vsyncpa [#allocation6], 1 }
 0x411   :  { %483 = vsyncpa [#allocation9], 1 }
 0x412   :  { %484 = vsyncpa [#allocation4], 1 }

</bundles_post_ra>
